<compile_context>
chip_gen: v5e
topology: v5e:2x2
jax: 0.10.0
libtpu: 0.0.40
codegen_flags: <defaults>
</compile_context>

<pallas_src>
import functools

import jax
import jax.numpy as jnp
from jax.experimental import pallas as pl
from jax.experimental.pallas import tpu as pltpu

INPUT_SIZE = 8
categorical_dim = 10
latent_dim = 10

HIDDEN = INPUT_SIZE * 16                  # 128: fc2 / fc3 output width
OUT_DIM = latent_dim * categorical_dim    # 100: fc4 output width
PAD_OUT = 128                             # lane-dense padded output width
TILE_B_MAX = 256                          # batch rows per grid step

_SELU_ALPHA = 1.6732632423543772
_SELU_SCALE = 1.0507009873554805
_GUMBEL_EPS = 1e-20
_NEG_LARGE = -1e30                        # "minus infinity" for masked lanes


def _selu(x):
    # exp(x) - 1 instead of expm1 keeps the kernel on the plain EUP exp path.
    return _SELU_SCALE * jnp.where(x > 0, x, _SELU_ALPHA * (jnp.exp(x) - 1.0))


def _vae_gumbel_enc_kernel(inv_temp_ref, x_ref, g_ref,
                           w12_ref, b12_ref, w3_ref, b3_ref, w4_ref, b4_ref,
                           code_ref, z_ref, *, hard):
    x = x_ref[...]
    h = _selu(jnp.dot(x, w12_ref[...], preferred_element_type=jnp.float32) + b12_ref[...])
    h = _selu(jnp.dot(h, w3_ref[...], preferred_element_type=jnp.float32) + b3_ref[...])
    code = _selu(jnp.dot(h, w4_ref[...], preferred_element_type=jnp.float32) + b4_ref[...])
    code_ref[...] = code          # padded lanes are selu(0) == 0; sliced off outside

    # Gumbel-softmax over the full (size-100, padded to 128) last axis — this
    # matches the PyTorch module, which applies gumbel_softmax to the flat
    # [B, 100] code with dim=-1.
    inv_temp = inv_temp_ref[0]
    lane = jax.lax.broadcasted_iota(jnp.int32, code.shape, 1)
    valid = lane < OUT_DIM
    y = jnp.where(valid, (code + g_ref[...]) * inv_temp, _NEG_LARGE)

    if hard:
        # argmax(softmax(y)) == argmax(y): skip exp / sum / divide entirely.
        # The forward value of the straight-through estimator is the one-hot.
        maxv = jnp.max(y, axis=-1, keepdims=True)
        cand = jnp.where(y == maxv, lane, y.shape[-1])
        idx = jnp.min(cand, axis=-1, keepdims=True)       # first maximal index
        z = (lane == idx).astype(code.dtype)
        # TODO(synk): the straight-through gradient ((y_hard - y).detach() + y)
        # is a backward-pass construct; apply it at the JAX level if training.
    else:
        m = jnp.max(y, axis=-1, keepdims=True)
        e = jnp.exp(y - m)                                # masked lanes -> 0
        inv_den = 1.0 / jnp.sum(e, axis=-1, keepdims=True)
        z = e * inv_den
    z_ref[...] = z


def init_params(key):
    """Deterministic init mimicking nn.Linear default U(-1/sqrt(fan_in), 1/sqrt(fan_in))."""
    dims = [(INPUT_SIZE, INPUT_SIZE * 4),
            (INPUT_SIZE * 4, INPUT_SIZE * 16),
            (INPUT_SIZE * 16, INPUT_SIZE * 16),
            (INPUT_SIZE * 16, latent_dim * categorical_dim)]
    params = []
    for fan_in, fan_out in dims:
        key, kw, kb = jax.random.split(key, 3)
        bound = 1.0 / (fan_in ** 0.5)
        w = jax.random.uniform(kw, (fan_in, fan_out), jnp.float32, -bound, bound)
        b = jax.random.uniform(kb, (1, fan_out), jnp.float32, -bound, bound)
        params += [w, b]
    return params


@functools.partial(jax.jit, static_argnames=("hard",))
def vae_gumbel_enc_forward(x, params, temp, noise_key, hard=False):
    w1, b1, w2, b2, w3, b3, w4, b4 = params
    B = x.shape[0]

    # --- parameter prep (tiny; done once per call by XLA) ---------------------
    w12 = jnp.dot(w1, w2)                                    # [8, 128]
    b12 = jnp.dot(b1, w2) + b2                               # [1, 128]
    w4p = jnp.pad(w4, ((0, 0), (0, PAD_OUT - OUT_DIM)))      # [128, 128]
    b4p = jnp.pad(b4, ((0, 0), (0, PAD_OUT - OUT_DIM)))      # [1, 128]
    inv_temp = jnp.reshape(1.0 / jnp.asarray(temp, jnp.float32), (1,))

    # --- Gumbel noise (torch.rand -> -log(-log(U+eps)+eps)), padded to 128 ----
    u = jax.random.uniform(noise_key, (B, OUT_DIM), jnp.float32)
    g = -jnp.log(-jnp.log(u + _GUMBEL_EPS) + _GUMBEL_EPS)
    g = jnp.pad(g, ((0, 0), (0, PAD_OUT - OUT_DIM)))

    # --- batch tiling ---------------------------------------------------------
    if B <= TILE_B_MAX:
        tile_b = max(8, ((B + 7) // 8) * 8)
    else:
        tile_b = TILE_B_MAX
    b_pad = ((B + tile_b - 1) // tile_b) * tile_b
    x = x.astype(jnp.float32)
    if b_pad != B:
        x = jnp.pad(x, ((0, b_pad - B), (0, 0)))
        g = jnp.pad(g, ((0, b_pad - B), (0, 0)))
    grid = (b_pad // tile_b,)

    cost = pl.CostEstimate(
        flops=2 * b_pad * (INPUT_SIZE * HIDDEN + HIDDEN * HIDDEN + HIDDEN * PAD_OUT),
        transcendentals=4 * b_pad * PAD_OUT,
        bytes_accessed=4 * (b_pad * (INPUT_SIZE + 3 * PAD_OUT)
                            + INPUT_SIZE * HIDDEN + HIDDEN * HIDDEN
                            + HIDDEN * PAD_OUT + 3 * PAD_OUT + 1),
    )

    def weight_spec(shape):
        return pl.BlockSpec(shape, lambda i: (0, 0))         # resident in VMEM

    kernel = functools.partial(_vae_gumbel_enc_kernel, hard=hard)
    code_p, z_p = pl.pallas_call(
        kernel,
        out_shape=(jax.ShapeDtypeStruct((b_pad, PAD_OUT), jnp.float32),
                   jax.ShapeDtypeStruct((b_pad, PAD_OUT), jnp.float32)),
        grid=grid,
        in_specs=[
            pl.BlockSpec(memory_space=pltpu.MemorySpace.SMEM),        # inv_temp
            pl.BlockSpec((tile_b, INPUT_SIZE), lambda i: (i, 0)),     # x tile
            pl.BlockSpec((tile_b, PAD_OUT), lambda i: (i, 0)),        # gumbel noise tile
            weight_spec((INPUT_SIZE, HIDDEN)),                        # w12 (fc1 folded into fc2)
            weight_spec((1, HIDDEN)),                                 # b12
            weight_spec((HIDDEN, HIDDEN)),                            # w3
            weight_spec((1, HIDDEN)),                                 # b3
            weight_spec((HIDDEN, PAD_OUT)),                           # w4 (lane-padded)
            weight_spec((1, PAD_OUT)),                                # b4 (lane-padded)
        ],
        out_specs=(pl.BlockSpec((tile_b, PAD_OUT), lambda i: (i, 0)),
                   pl.BlockSpec((tile_b, PAD_OUT), lambda i: (i, 0))),
        compiler_params=pltpu.CompilerParams(dimension_semantics=("parallel",)),
        cost_estimate=cost,
    )(inv_temp, x, g, w12, b12, w3, b3, w4p, b4p)

    code = code_p[:B, :OUT_DIM]
    z = z_p[:B, :OUT_DIM]
    # TODO(synk): original PyTorch `code.view(code.size(), latent_dim, categorical_dim)`
    # is malformed (passes a torch.Size plus ints); intended [B, latent, categorical].
    q_y = code.reshape(B, latent_dim, categorical_dim)
    return code, q_y, z


def _reference_forward(x, params, temp, noise_key, hard):
    """Pure-JAX reference matching the PyTorch forward."""
    w1, b1, w2, b2, w3, b3, w4, b4 = params
    a = jnp.dot(x, w1) + b1
    a = jax.nn.selu(jnp.dot(a, w2) + b2)
    a = jax.nn.selu(jnp.dot(a, w3) + b3)
    code = jax.nn.selu(jnp.dot(a, w4) + b4)
    u = jax.random.uniform(noise_key, code.shape, jnp.float32)
    g = -jnp.log(-jnp.log(u + _GUMBEL_EPS) + _GUMBEL_EPS)
    y = jax.nn.softmax((code + g) / temp, axis=-1)
    if hard:
        y = jax.nn.one_hot(jnp.argmax(y, axis=-1), code.shape[-1], dtype=code.dtype)
    return code, y


if __name__ == "__main__":
    root = jax.random.PRNGKey(0)
    pkey, xkey, nkey = jax.random.split(root, 3)
    params = init_params(pkey)

    B = 8
    x = jax.random.normal(xkey, (B, INPUT_SIZE), jnp.float32)
    temp = jnp.float32(0.5)

    code, q_y, z = vae_gumbel_enc_forward(x, params, temp, nkey, hard=False)
    jax.block_until_ready((code, q_y, z))
    code_h, q_y_h, z_h = vae_gumbel_enc_forward(x, params, temp, nkey, hard=True)
    jax.block_until_ready((code_h, q_y_h, z_h))

    assert code.shape == (B, latent_dim * categorical_dim)
    assert q_y.shape == (B, latent_dim, categorical_dim)
    assert z.shape == (B, latent_dim * categorical_dim)
    assert z_h.shape == (B, latent_dim * categorical_dim)

    # Numerical check against the pure-JAX reference (soft path).
    ref_code, ref_z = _reference_forward(x, params, temp, nkey, hard=False)
    assert jnp.allclose(code, ref_code, atol=1e-2, rtol=1e-2)
    assert jnp.allclose(z, ref_z, atol=1e-2, rtol=1e-2)

    # Hard path: exact one-hot rows over the (flat, size-100) categorical axis,
    # which also validates that the 28 padded lanes were masked correctly.
    assert jnp.allclose(jnp.sum(z_h, axis=-1), 1.0)
    assert bool(jnp.all((z_h == 0.0) | (z_h == 1.0)))

    print("KERNEL_OK")
</pallas_src>

<mosaic_0001>
module attributes {stable_mosaic.version = 11 : i64} {
  func.func @_vae_gumbel_enc_kernel(%arg0: i32, %arg1: memref<1xf32, #tpu.memory_space<smem>>, %arg2: memref<8x8xf32, #tpu.memory_space<vmem>>, %arg3: memref<8x128xf32, #tpu.memory_space<vmem>>, %arg4: memref<8x128xf32, #tpu.memory_space<vmem>>, %arg5: memref<1x128xf32, #tpu.memory_space<vmem>>, %arg6: memref<128x128xf32, #tpu.memory_space<vmem>>, %arg7: memref<1x128xf32, #tpu.memory_space<vmem>>, %arg8: memref<128x128xf32, #tpu.memory_space<vmem>>, %arg9: memref<1x128xf32, #tpu.memory_space<vmem>>, %arg10: memref<8x128xf32, #tpu.memory_space<vmem>>, %arg11: memref<8x128xf32, #tpu.memory_space<vmem>>) attributes {dimension_semantics = [#tpu.dimension_semantics<parallel>], iteration_bounds = array<i64: 1>, scalar_prefetch = 0 : i64, scratch_operands = 0 : i64, tpu.core_type = #tpu.core_type<tc>, window_params = [{transform_indices = @transform_0, window_bounds = array<i64: 1>}, {transform_indices = @transform_1, window_bounds = array<i64: 8, 8>}, {transform_indices = @transform_2, window_bounds = array<i64: 8, 128>}, {pipeline_mode = #tpu.pipeline_mode<synchronous>, transform_indices = @transform_3, window_bounds = array<i64: 8, 128>}, {pipeline_mode = #tpu.pipeline_mode<synchronous>, transform_indices = @transform_4, window_bounds = array<i64: 1, 128>}, {pipeline_mode = #tpu.pipeline_mode<synchronous>, transform_indices = @transform_5, window_bounds = array<i64: 128, 128>}, {pipeline_mode = #tpu.pipeline_mode<synchronous>, transform_indices = @transform_6, window_bounds = array<i64: 1, 128>}, {pipeline_mode = #tpu.pipeline_mode<synchronous>, transform_indices = @transform_7, window_bounds = array<i64: 128, 128>}, {pipeline_mode = #tpu.pipeline_mode<synchronous>, transform_indices = @transform_8, window_bounds = array<i64: 1, 128>}, {transform_indices = @transform_9, window_bounds = array<i64: 8, 128>}, {transform_indices = @transform_10, window_bounds = array<i64: 8, 128>}]} {
    %c0 = arith.constant 0 : index
    %c0_0 = arith.constant 0 : index
    %0 = vector.load %arg2[%c0, %c0_0] : memref<8x8xf32, #tpu.memory_space<vmem>>, vector<8x8xf32>
    %c0_1 = arith.constant 0 : index
    %c0_2 = arith.constant 0 : index
    %1 = vector.load %arg4[%c0_1, %c0_2] : memref<8x128xf32, #tpu.memory_space<vmem>>, vector<8x128xf32>
    %cst = arith.constant dense<0.000000e+00> : vector<8x128xf32>
    %2 = tpu.matmul %0, %1, %cst {dimension_numbers = #tpu.dot_dimension_numbers<[1], [0], [0], [1], [0, 0, 1, 1], [], []>} : vector<8x8xf32>, vector<8x128xf32>, vector<8x128xf32> -> vector<8x128xf32>
    %c0_3 = arith.constant 0 : index
    %c0_4 = arith.constant 0 : index
    %3 = vector.load %arg5[%c0_3, %c0_4] : memref<1x128xf32, #tpu.memory_space<vmem>>, vector<1x128xf32>
    %4 = vector.broadcast %3 : vector<1x128xf32> to vector<8x128xf32>
    %5 = arith.addf %2, %4 : vector<8x128xf32>
    %cst_5 = arith.constant 0.000000e+00 : f32
    %6 = vector.broadcast %cst_5 : f32 to vector<8x128xf32>
    %7 = arith.cmpf ogt, %5, %6 : vector<8x128xf32>
    %8 = math.exp %5 : vector<8x128xf32>
    %cst_6 = arith.constant 1.000000e+00 : f32
    %9 = vector.broadcast %cst_6 : f32 to vector<8x128xf32>
    %10 = arith.subf %8, %9 : vector<8x128xf32>
    %cst_7 = arith.constant 1.67326319 : f32
    %11 = vector.broadcast %cst_7 : f32 to vector<8x128xf32>
    %12 = arith.mulf %11, %10 : vector<8x128xf32>
    %13 = arith.select %7, %5, %12 : vector<8x128xi1>, vector<8x128xf32>
    %cst_8 = arith.constant 1.05070102 : f32
    %14 = vector.broadcast %cst_8 : f32 to vector<8x128xf32>
    %15 = arith.mulf %14, %13 : vector<8x128xf32>
    %c0_9 = arith.constant 0 : index
    %c0_10 = arith.constant 0 : index
    %16 = vector.load %arg6[%c0_9, %c0_10] : memref<128x128xf32, #tpu.memory_space<vmem>>, vector<128x128xf32>
    %cst_11 = arith.constant dense<0.000000e+00> : vector<8x128xf32>
    %17 = tpu.matmul %15, %16, %cst_11 {dimension_numbers = #tpu.dot_dimension_numbers<[1], [0], [0], [1], [0, 0, 1, 1], [], []>} : vector<8x128xf32>, vector<128x128xf32>, vector<8x128xf32> -> vector<8x128xf32>
    %c0_12 = arith.constant 0 : index
    %c0_13 = arith.constant 0 : index
    %18 = vector.load %arg7[%c0_12, %c0_13] : memref<1x128xf32, #tpu.memory_space<vmem>>, vector<1x128xf32>
    %19 = vector.broadcast %18 : vector<1x128xf32> to vector<8x128xf32>
    %20 = arith.addf %17, %19 : vector<8x128xf32>
    %cst_14 = arith.constant 0.000000e+00 : f32
    %21 = vector.broadcast %cst_14 : f32 to vector<8x128xf32>
    %22 = arith.cmpf ogt, %20, %21 : vector<8x128xf32>
    %23 = math.exp %20 : vector<8x128xf32>
    %cst_15 = arith.constant 1.000000e+00 : f32
    %24 = vector.broadcast %cst_15 : f32 to vector<8x128xf32>
    %25 = arith.subf %23, %24 : vector<8x128xf32>
    %cst_16 = arith.constant 1.67326319 : f32
    %26 = vector.broadcast %cst_16 : f32 to vector<8x128xf32>
    %27 = arith.mulf %26, %25 : vector<8x128xf32>
    %28 = arith.select %22, %20, %27 : vector<8x128xi1>, vector<8x128xf32>
    %cst_17 = arith.constant 1.05070102 : f32
    %29 = vector.broadcast %cst_17 : f32 to vector<8x128xf32>
    %30 = arith.mulf %29, %28 : vector<8x128xf32>
    %c0_18 = arith.constant 0 : index
    %c0_19 = arith.constant 0 : index
    %31 = vector.load %arg8[%c0_18, %c0_19] : memref<128x128xf32, #tpu.memory_space<vmem>>, vector<128x128xf32>
    %cst_20 = arith.constant dense<0.000000e+00> : vector<8x128xf32>
    %32 = tpu.matmul %30, %31, %cst_20 {dimension_numbers = #tpu.dot_dimension_numbers<[1], [0], [0], [1], [0, 0, 1, 1], [], []>} : vector<8x128xf32>, vector<128x128xf32>, vector<8x128xf32> -> vector<8x128xf32>
    %c0_21 = arith.constant 0 : index
    %c0_22 = arith.constant 0 : index
    %33 = vector.load %arg9[%c0_21, %c0_22] : memref<1x128xf32, #tpu.memory_space<vmem>>, vector<1x128xf32>
    %34 = vector.broadcast %33 : vector<1x128xf32> to vector<8x128xf32>
    %35 = arith.addf %32, %34 : vector<8x128xf32>
    %cst_23 = arith.constant 0.000000e+00 : f32
    %36 = vector.broadcast %cst_23 : f32 to vector<8x128xf32>
    %37 = arith.cmpf ogt, %35, %36 : vector<8x128xf32>
    %38 = math.exp %35 : vector<8x128xf32>
    %cst_24 = arith.constant 1.000000e+00 : f32
    %39 = vector.broadcast %cst_24 : f32 to vector<8x128xf32>
    %40 = arith.subf %38, %39 : vector<8x128xf32>
    %cst_25 = arith.constant 1.67326319 : f32
    %41 = vector.broadcast %cst_25 : f32 to vector<8x128xf32>
    %42 = arith.mulf %41, %40 : vector<8x128xf32>
    %43 = arith.select %37, %35, %42 : vector<8x128xi1>, vector<8x128xf32>
    %cst_26 = arith.constant 1.05070102 : f32
    %44 = vector.broadcast %cst_26 : f32 to vector<8x128xf32>
    %45 = arith.mulf %44, %43 : vector<8x128xf32>
    %c0_27 = arith.constant 0 : index
    %c0_28 = arith.constant 0 : index
    %46 = vector.load %arg10[%c0_27, %c0_28] : memref<8x128xf32, #tpu.memory_space<vmem>>, vector<8x128xf32>
    tpu.vector_store %arg10[%c0_27, %c0_28], %45 {strides = array<i32>} : memref<8x128xf32, #tpu.memory_space<vmem>>, vector<8x128xf32>,
    %c0_29 = arith.constant 0 : index
    %47 = memref.load %arg1[%c0_29] : memref<1xf32, #tpu.memory_space<smem>>
    %48 = tpu.iota {dimensions = array<i32: 1>} : vector<8x128xi32>
    %c100_i32 = arith.constant 100 : i32
    %49 = vector.broadcast %c100_i32 : i32 to vector<8x128xi32>
    %50 = arith.cmpi slt, %48, %49 : vector<8x128xi32>
    %c0_30 = arith.constant 0 : index
    %c0_31 = arith.constant 0 : index
    %51 = vector.load %arg3[%c0_30, %c0_31] : memref<8x128xf32, #tpu.memory_space<vmem>>, vector<8x128xf32>
    %52 = arith.addf %45, %51 : vector<8x128xf32>
    %53 = vector.broadcast %47 : f32 to vector<8x128xf32>
    %54 = arith.mulf %52, %53 : vector<8x128xf32>
    %cst_32 = arith.constant -1.000000e+30 : f32
    %55 = vector.broadcast %cst_32 : f32 to vector<8x128xf32>
    %56 = arith.select %50, %54, %55 : vector<8x128xi1>, vector<8x128xf32>
    %cst_33 = arith.constant dense<0xFF800000> : vector<8xf32>
    %57 = vector.multi_reduction <maximumf>, %56, %cst_33 [1] : vector<8x128xf32> to vector<8xf32>
    %58 = vector.shape_cast %57 : vector<8xf32> to vector<8x1xf32>
    %59 = vector.broadcast %58 : vector<8x1xf32> to vector<8x128xf32>
    %60 = arith.subf %56, %59 : vector<8x128xf32>
    %61 = math.exp %60 : vector<8x128xf32>
    %cst_34 = arith.constant dense<0.000000e+00> : vector<8xf32>
    %62 = vector.multi_reduction <add>, %61, %cst_34 [1] : vector<8x128xf32> to vector<8xf32>
    %63 = vector.shape_cast %62 : vector<8xf32> to vector<8x1xf32>
    %cst_35 = arith.constant 1.000000e+00 : f32
    %64 = vector.broadcast %cst_35 : f32 to vector<8x1xf32>
    %65 = arith.divf %64, %63 : vector<8x1xf32>
    %66 = vector.broadcast %65 : vector<8x1xf32> to vector<8x128xf32>
    %67 = arith.mulf %61, %66 : vector<8x128xf32>
    %c0_36 = arith.constant 0 : index
    %c0_37 = arith.constant 0 : index
    %68 = vector.load %arg11[%c0_36, %c0_37] : memref<8x128xf32, #tpu.memory_space<vmem>>, vector<8x128xf32>
    tpu.vector_store %arg11[%c0_36, %c0_37], %67 {strides = array<i32>} : memref<8x128xf32, #tpu.memory_space<vmem>>, vector<8x128xf32>,
    return
  }
  func.func @transform_0(%arg0: i32) -> i32 {
    %c0_i32 = arith.constant 0 : i32
    %c0_i32_0 = arith.constant 0 : i32
    return %c0_i32 : i32
  }
  func.func @transform_1(%arg0: i32) -> (i32, i32) {
    %c0_i32 = arith.constant 0 : i32
    %c0_i32_0 = arith.constant 0 : i32
    return %arg0, %c0_i32 : i32, i32
  }
  func.func @transform_2(%arg0: i32) -> (i32, i32) {
    %c0_i32 = arith.constant 0 : i32
    %c0_i32_0 = arith.constant 0 : i32
    return %arg0, %c0_i32 : i32, i32
  }
  func.func @transform_3(%arg0: i32) -> (i32, i32) {
    %c0_i32 = arith.constant 0 : i32
    %c0_i32_0 = arith.constant 0 : i32
    %c0_i32_1 = arith.constant 0 : i32
    return %c0_i32, %c0_i32_0 : i32, i32
  }
  func.func @transform_4(%arg0: i32) -> (i32, i32) {
    %c0_i32 = arith.constant 0 : i32
    %c0_i32_0 = arith.constant 0 : i32
    %c0_i32_1 = arith.constant 0 : i32
    return %c0_i32, %c0_i32_0 : i32, i32
  }
  func.func @transform_5(%arg0: i32) -> (i32, i32) {
    %c0_i32 = arith.constant 0 : i32
    %c0_i32_0 = arith.constant 0 : i32
    %c0_i32_1 = arith.constant 0 : i32
    return %c0_i32, %c0_i32_0 : i32, i32
  }
  func.func @transform_6(%arg0: i32) -> (i32, i32) {
    %c0_i32 = arith.constant 0 : i32
    %c0_i32_0 = arith.constant 0 : i32
    %c0_i32_1 = arith.constant 0 : i32
    return %c0_i32, %c0_i32_0 : i32, i32
  }
  func.func @transform_7(%arg0: i32) -> (i32, i32) {
    %c0_i32 = arith.constant 0 : i32
    %c0_i32_0 = arith.constant 0 : i32
    %c0_i32_1 = arith.constant 0 : i32
    return %c0_i32, %c0_i32_0 : i32, i32
  }
  func.func @transform_8(%arg0: i32) -> (i32, i32) {
    %c0_i32 = arith.constant 0 : i32
    %c0_i32_0 = arith.constant 0 : i32
    %c0_i32_1 = arith.constant 0 : i32
    return %c0_i32, %c0_i32_0 : i32, i32
  }
  func.func @transform_9(%arg0: i32) -> (i32, i32) {
    %c0_i32 = arith.constant 0 : i32
    %c0_i32_0 = arith.constant 0 : i32
    return %arg0, %c0_i32 : i32, i32
  }
  func.func @transform_10(%arg0: i32) -> (i32, i32) {
    %c0_i32 = arith.constant 0 : i32
    %c0_i32_0 = arith.constant 0 : i32
    return %arg0, %c0_i32 : i32, i32
  }
}

</mosaic_0001>

<bundles_post_ra>
// kernel: vae_gumbel_enc_forward.1
= control target key start
LH: loop header
LB: loop body
LE: loop exit
PB: predicated region body
PF: predicated region fallthrough
CT: control target
= control target key end

     0   :  { %vm42_vm0 = vcmask 64512   ;;  %s444_s0 = inlined_call_operand.<no memory space> [shape: f32[1], index: 0, kind: input, shape index: {}]   ;;  %s445_s1 = inlined_call_operand.vmem [shape: f32[8,8], index: 1, kind: input, shape index: {}]   ;;  %s446_s2 = inlined_call_operand.vmem [shape: f32[8,128], index: 2, kind: input, shape index: {}]   ;;  %s447_s3 = inlined_call_operand.vmem [shape: f32[8,128], index: 3, kind: input, shape index: {}]   ;;  %s448_s4 = inlined_call_operand.vmem [shape: f32[1,128], index: 4, kind: input, shape index: {}]   ;;  %s449_s5 = inlined_call_operand.vmem [shape: f32[128,128], index: 5, kind: input, shape index: {}]   ;;  %s450_s6 = inlined_call_operand.vmem [shape: f32[1,128], index: 6, kind: input, shape index: {}]   ;;  %s451_s7 = inlined_call_operand.vmem [shape: f32[128,128], index: 7, kind: input, shape index: {}]   ;;  %s452_s8 = inlined_call_operand.vmem [shape: f32[1,128], index: 8, kind: input, shape index: {}]   ;;  %s453_s9 = inlined_call_operand.vmem [shape: f32[8,128], index: 9, kind: output, shape index: {0}]   ;;  %s454_s10 = inlined_call_operand.hbm [shape: f32[8,128], index: 10, kind: output, shape index: {1}]  }
   0x1   :  { %v37_v0 = vld [vmem:[%s447_s3] sm:$0xff]  ;;  %v88_v2 = vld [vmem:[%s449_s5 + $0x78] sm:$0xff]  ;;  %v87_v3 = vld [vmem:[%s449_s5 + $0x70] sm:$0xff] }
   0x2   :  { %v36_v1 = vld [vmem:[%s445_s1] sm:$0xff]  ;;  %61 = vmatpush.msra.mxu0 %v37_v0  ;;  %93 = vmatpush.msra.mxu1 %v88_v2  ;;  %v86_v4 = vld [vmem:[%s449_s5 + $0x68] sm:$0xff] }
   0x3   :  { %221 = vmatmul.msk.f32.vlgmr.msra.gmra.mxu0 %vm42_vm0, %v36_v1  ;;  %v85_v5 = vld [vmem:[%s449_s5 + $0x60] sm:$0xff] }
   0x4   :  { %94 = vmatpush.msra.mxu1 %v87_v3 }
   0x5   :  { %17 = vsyncpa [#allocation4], 0  ;;  %v84_v6 = vld [vmem:[%s449_s5 + $0x58] sm:$0xff]  ;;  %v83_v7 = vld [vmem:[%s449_s5 + $0x50] sm:$0xff]  ;;  %v169_v58 = vlaneseq  ;;  %v174_v0 = vstv %s444_s0  ;;  %s265_s0 = smov [#allocation3]  }
   0x6   :  { %95 = vmatpush.msra.mxu1 %v86_v4  ;;  %v82_v8 = vld [vmem:[%s449_s5 + $0x48] sm:$0xff]  ;;  %v81_v9 = vld [vmem:[%s449_s5 + $0x40] sm:$0xff]  ;;  %v80_v10 = vld [vmem:[%s449_s5 + $0x38] sm:$0xff] }
   0x7   :  { %v79_v11 = vld [vmem:[%s449_s5 + $0x30] sm:$0xff]  ;;  %v78_v12 = vld [vmem:[%s449_s5 + $0x28] sm:$0xff]  ;;  %v77_v13 = vld [vmem:[%s449_s5 + $0x20] sm:$0xff]  ;;  %v170_v61 = vand.u32 127, %v169_v58 }
   0x8   :  { %96 = vmatpush.msra.mxu1 %v85_v5  ;;  %v76_v14 = vld [vmem:[%s449_s5 + $0x18] sm:$0xff]  ;;  %v75_v15 = vld [vmem:[%s449_s5 + $0x10] sm:$0xff]  ;;  %v74_v16 = vld [vmem:[%s449_s5 + $0x8] sm:$0xff] }
   0x9   :  { %v73_v17 = vld [vmem:[%s449_s5] sm:$0xff]  ;;  %v135_v18 = vld [vmem:[%s451_s7 + $0x78] sm:$0xff]  ;;  %v134_v19 = vld [vmem:[%s451_s7 + $0x70] sm:$0xff]  ;;  %vm171_vm4 = vcmp.lt.s32.totalorder %v170_v61, 100 }
   0xa   :  { %97 = vmatpush.msra.mxu1 %v84_v6  ;;  %140 = vmatpush.msra.mxu2 %v135_v18  ;;  %v133_v20 = vld [vmem:[%s451_s7 + $0x68] sm:$0xff]  ;;  %v132_v21 = vld [vmem:[%s451_s7 + $0x60] sm:$0xff]  ;;  %v131_v22 = vld [vmem:[%s451_s7 + $0x58] sm:$0xff] }
   0xb   :  { %v130_v23 = vld [vmem:[%s451_s7 + $0x50] sm:$0xff]  ;;  %v226_v24 = vld [vmem:[%s448_s4] ss:$0 sm:$0xff]  ;;  %v129_v33 = vld [vmem:[%s451_s7 + $0x48] sm:$0xff]  ;;  %s210_s4 = sshll.u32 %s454_s10, 4  ;;  %s211_s4 = int_to_ptr.hbm [resolvable:$true] %s210_s4 }
   0xc   :  { %98 = vmatpush.msra.mxu1 %v83_v7  ;;  %141 = vmatpush.msra.mxu2 %v134_v19  ;;  %v128_v34 = vld [vmem:[%s451_s7 + $0x40] sm:$0xff]  ;;  %v127_v35 = vld [vmem:[%s451_s7 + $0x38] sm:$0xff]  ;;  %v126_v36 = vld [vmem:[%s451_s7 + $0x30] sm:$0xff] }
   0xd   :  { %v125_v37 = vld [vmem:[%s451_s7 + $0x28] sm:$0xff]  ;;  %v124_v38 = vld [vmem:[%s451_s7 + $0x20] sm:$0xff]  ;;  %v123_v39 = vld [vmem:[%s451_s7 + $0x18] sm:$0xff] }
   0xe   :  { %99 = vmatpush.msra.mxu1 %v82_v8  ;;  %142 = vmatpush.msra.mxu2 %v133_v20  ;;  %v122_v40 = vld [vmem:[%s451_s7 + $0x10] sm:$0xff]  ;;  %v121_v41 = vld [vmem:[%s451_s7 + $0x8] sm:$0xff]  ;;  %v120_v42 = vld [vmem:[%s451_s7] sm:$0xff] }
   0xf   :  { %v227_v43 = vld [vmem:[%s450_s6] ss:$0 sm:$0xff] }
  0x10   :  { %100 = vmatpush.msra.mxu1 %v81_v9  ;;  %143 = vmatpush.msra.mxu2 %v132_v21  ;;  %v228_v52 = vld [vmem:[%s452_s8] ss:$0 sm:$0xff] }
  0x11   :  { %v172_v62 = vld [vmem:[%s446_s2] sm:$0xff]  ;;  %s208_s2 = sshll.u32 %s265_s0, 4  ;;  %s209_s2 = int_to_ptr.vmem [resolvable:$true] %s208_s2 }
  0x12   :  { %101 = vmatpush.msra.mxu1 %v80_v10  ;;  %144 = vmatpush.msra.mxu2 %v131_v22 }
  0x14   :  { %102 = vmatpush.msra.mxu1 %v79_v11  ;;  %145 = vmatpush.msra.mxu2 %v130_v23 }
  0x16   :  { %103 = vmatpush.msra.mxu1 %v78_v12  ;;  %146 = vmatpush.msra.mxu2 %v129_v33 }
  0x18   :  { %104 = vmatpush.msra.mxu1 %v77_v13  ;;  %147 = vmatpush.msra.mxu2 %v128_v34 }
  0x1a   :  { %105 = vmatpush.msra.mxu1 %v76_v14  ;;  %148 = vmatpush.msra.mxu2 %v127_v35 }
  0x1c   :  { %106 = vmatpush.msra.mxu1 %v75_v15  ;;  %149 = vmatpush.msra.mxu2 %v126_v36 }
  0x1e   :  { %107 = vmatpush.msra.mxu1 %v74_v16  ;;  %150 = vmatpush.msra.mxu2 %v125_v37 }
  0x20   :  { %108 = vmatpush.msra.mxu1 %v73_v17  ;;  %151 = vmatpush.msra.mxu2 %v124_v38 }
  0x22   :  { %152 = vmatpush.msra.mxu2 %v123_v39 }
  0x24   :  { %153 = vmatpush.msra.mxu2 %v122_v40 }
  0x26   :  { %154 = vmatpush.msra.mxu2 %v121_v41 }
  0x28   :  { %155 = vmatpush.msra.mxu2 %v120_v42 }
  0x80   :  { %v63_v25 = vpop.f32.mrf.mxu0 }
  0x81   :  { %v64_v26 = vadd.f32 %v226_v24, %v63_v25 }
  0x83   :  { %v67_v27 = vmul.f32 1.442695, %v64_v26  ;;  %vm66_vm1 = vcmp.gt.f32.partialorder %v64_v26, 0.0 }
  0x85   :  { %229 = vpow2.f32 %v67_v27 }
  0x8b   :  { %v230_v28 = vpop.eup %229 }
  0x8c   :  { %v222_v29 = vadd.f32 -1.0, %v230_v28 }
  0x8e   :  { %v70_v30 = vmul.f32 1.6732632, %v222_v29 }
  0x90   :  { %v71_v31 = vsel %vm66_vm1, %v64_v26, %v70_v30 }
  0x91   :  { %v72_v32 = vmul.f32 1.050701, %v71_v31 }
  0x93   :  { %109 = vmatmul.f32.vlgmr.msra.gmra.mxu1 %v72_v32 }
 0x110   :  { %v110_v44 = vpop.f32.mrf.mxu1 }
 0x111   :  { %v111_v45 = vadd.f32 %v227_v43, %v110_v44 }
 0x113   :  { %v114_v46 = vmul.f32 1.442695, %v111_v45  ;;  %vm113_vm2 = vcmp.gt.f32.partialorder %v111_v45, 0.0 }
 0x115   :  { %231 = vpow2.f32 %v114_v46 }
 0x11b   :  { %v232_v47 = vpop.eup %231 }
 0x11c   :  { %v223_v48 = vadd.f32 -1.0, %v232_v47 }
 0x11e   :  { %v117_v49 = vmul.f32 1.6732632, %v223_v48 }
 0x120   :  { %v118_v50 = vsel %vm113_vm2, %v111_v45, %v117_v49 }
 0x121   :  { %v119_v51 = vmul.f32 1.050701, %v118_v50 }
 0x123   :  { %156 = vmatmul.f32.vlgmr.msra.gmra.mxu2 %v119_v51 }
 0x1a6   :  { %v157_v53 = vpop.f32.mrf.mxu2 }
 0x1a7   :  { %v158_v54 = vadd.f32 %v228_v52, %v157_v53 }
 0x1a9   :  { %v161_v55 = vmul.f32 1.442695, %v158_v54  ;;  %vm160_vm3 = vcmp.gt.f32.partialorder %v158_v54, 0.0 }
 0x1ab   :  { %233 = vpow2.f32 %v161_v55 }
 0x1b1   :  { %v234_v56 = vpop.eup %233 }
 0x1b2   :  { %v224_v57 = vadd.f32 -1.0, %v234_v56 }
 0x1b4   :  { %v164_v59 = vmul.f32 1.6732632, %v224_v57 }
 0x1b6   :  { %v165_v60 = vsel %vm160_vm3, %v158_v54, %v164_v59 }
 0x1b7   :  { %v166_v63 = vmul.f32 1.050701, %v165_v60 }
 0x1b9   :  { %167 = vst [vmem:[%s453_s9] sm:$0xff] %v166_v63  ;;  %v173_v1 = vadd.f32 %v172_v62, %v166_v63 }
 0x1bb   :  { %v175_v2 = vmul.f32 %v174_v0, %v173_v1 }
 0x1bd   :  { %v176_v3 = vsel %vm171_vm4, %v175_v2, -1e+30 }
 0x1be   :  { %177 = vmax.xlane.f32.xlu0 %v176_v3 }
 0x231   :  { %v178_v4 = vpop.xlane.xlu0 %177 }
 0x232   :  { %v179_v5 = vsub.f32 %v176_v3, %v178_v4 }
 0x234   :  { %v180_v6 = vmul.f32 1.442695, %v179_v5 }
 0x236   :  { %235 = vpow2.f32 %v180_v6 }
 0x23c   :  { %v236_v7 = vpop.eup %235 }
 0x23d   :  { %182 = vadd.xlane.f32.xlu0 %v236_v7 }
 0x2b0   :  { %v183_v8 = vpop.xlane.xlu0 %182 }
 0x2b1   :  { %237 = vrcp.f32 %v183_v8  ;;  %v195_v12 = vand.u32 2147483648, %v183_v8  ;;  %v193_v14 = vand.u32 2147483647, %v183_v8  ;;  %vm189_vm6 = vweird.f32 %v183_v8 }
 0x2b3   :  { %v196_v16 = vor.u32 1.1754944e-38, %v195_v12  ;;  %vm194_vm8 = vcmp.eq.f32.partialorder %v193_v14, 8.507059e+37 }
 0x2b7   :  { %v238_v9 = vpop.eup %237 }
 0x2b8   :  { %v185_v10 = vmul.f32 %v238_v9, %v183_v8  ;;  %vm190_vm5 = vweird.f32 %v238_v9 }
 0x2b9   :  { %vm191_vm7 = vmor %vm189_vm6, %vm190_vm5 }
 0x2ba   :  { %v186_v11 = vsub.f32 1.0, %v185_v10 }
 0x2bc   :  { %v187_v13 = vmul.f32 %v238_v9, %v186_v11 }
 0x2be   :  { %v188_v15 = vadd.f32 %v238_v9, %v187_v13 }
 0x2c0   :  { %v192_v17 = vsel %vm191_vm7, %v238_v9, %v188_v15 }
 0x2c1   :  { %v197_v18 = vsel %vm194_vm8, %v196_v16, %v192_v17 }
 0x2c2   :  { %v199_v19 = vmul.f32 %v236_v7, %v197_v18 }
 0x2c4   :  { %200 = vst [vmem:[#allocation3] sm:$0xff] %v199_v19 }
 0x2c5   :  { %213 = dma.vmem_to_hbm [thread:$0]  %s209_s2, 128, %s211_s4, [#allocation4]  }
 0x2c6   :  { %263 = dma.done.wait [#allocation4], 128  }
 0x2c7   :  { %264 = vsyncadd [#allocation4], 4294967168 }
 0x2c8   :  { %220 = vsyncpa [#allocation4], 1 }

</bundles_post_ra>
